<compile_context>
chip_gen: v6e
topology: v6e:2x2x1
jax: 0.10.0
libtpu: 0.0.40
codegen_flags: <defaults>
</compile_context>

<pallas_src>
import functools

import jax
import jax.numpy as jnp
from jax.experimental import pallas as pl
from jax.experimental.pallas import tpu as pltpu


# ----------------------------------------------------------------------------
# Pallas kernel
# ----------------------------------------------------------------------------
def _make_out_oct_kernel(wg: int):
    """Fused OutOctConv kernel. `wg` = W // r output column-groups per row."""

    def kernel(xh_ref, xl_ref, whh_ref, wlh_ref, bias_ref, o_ref):
        # xh_ref : (th*wg,       r*cin_h)      bf16  high-freq rows of this tile
        # xl_ref : ((th//2)*wg,  (r//2)*cin_l) bf16  matching half-res rows
        # whh_ref: (r*cin_h,     r*cout)       bf16  kron(I_r, w_hh*scale)
        # wlh_ref: ((r//2)*cin_l, r*cout)      bf16  column-pair duplicated
        # bias   : (1, r*cout)                 f32   folded BN shift
        # o_ref  : (th*wg, r*cout)             f32
        hi = jnp.dot(xh_ref[...], whh_ref[...],
                     preferred_element_type=jnp.float32)        # (th*wg,  Cp)
        lo = jnp.dot(xl_ref[...], wlh_ref[...],
                     preferred_element_type=jnp.float32)        # (thh*wg, Cp)

        m_half, cp = lo.shape
        thh = m_half // wg

        # Row half of the nearest-neighbour upsample: each group of `wg` rows
        # of `lo` (= one low-res output row) feeds both output row parities.
        # wg % 8 == 0 -> these reshapes are pure sublane-tile re-indexing; the
        # duplication is fused into the add (no materialized lo_full copy).
        hi4 = hi.reshape(thh, 2, wg, cp)
        lo4 = lo.reshape(thh, 1, wg, cp)
        b4 = bias_ref[...].reshape(1, 1, 1, cp)
        y = hi4 + lo4 + b4
        # TODO(synk): OctaveConvBN source unavailable -- assumed conv +
        # eval-mode BN, no activation; if it ends in ReLU, add
        # jnp.maximum(y, 0) here (free on the VPU).
        o_ref[...] = y.reshape(2 * thh * wg, cp).astype(o_ref.dtype)

    return kernel


# ----------------------------------------------------------------------------
# Wrapper helpers
# ----------------------------------------------------------------------------
def _fold_bn_weights(params, eps=1e-5):
    """Fold eval-mode BN into the 1x1 conv weights (bf16) and a bias (f32)."""
    scale = params["gamma"] / jnp.sqrt(params["running_var"] + eps)
    shift = params["beta"] - params["running_mean"] * scale
    # PyTorch conv weight (cout, cin, 1, 1) -> (cin, cout) matmul layout.
    whh = (params["w_hh"][:, :, 0, 0] * scale[:, None]).T
    wlh = (params["w_lh"][:, :, 0, 0] * scale[:, None]).T
    return whh.astype(jnp.bfloat16), wlh.astype(jnp.bfloat16), shift


def _pick_column_group(W, cin_h, cout):
    """Pick the column-group width r (even, W % r == 0, (W//r) % 8 == 0).

    Prefer the smallest r making the output lane width r*cout a multiple of
    128 (unmasked vector stores) while the expanded weight stays small;
    otherwise the largest r with r*cout <= 128 (small block-diagonal
    expansion => minimal wasted MXU flops)."""
    valid = [r for r in range(2, W + 1, 2)
             if W % r == 0 and (W // r) % 8 == 0]
    if not valid:
        return 2
    for r in valid:                                   # smallest lane-dense r
        if (r * cout) % 128 == 0 and (r * cin_h) * (r * cout) * 2 <= (1 << 20):
            return r
    small = [r for r in valid if r * cout <= 128]
    return max(small) if small else min(valid)


def _pick_row_tile(H, wg, kh, kl, cp, max_block_bytes=3 * 1024 * 1024):
    """Largest row tile (multiple of 4 dividing H) with per-step blocks
    (x_h + x_l + out, before double-buffering) <= ~3 MiB."""
    best = 4
    for th in range(4, H + 1, 4):
        if H % th:
            continue
        blk = th * wg * kh * 2 + (th // 2) * wg * kl * 2 + th * wg * cp * 4
        if blk <= max_block_bytes:
            best = th
    return best


# ----------------------------------------------------------------------------
# OutOctConv forward
# ----------------------------------------------------------------------------
def out_oct_conv_forward(x_h, x_l, params):
    """OutOctConv forward.  x_h, x_l are NCHW (PyTorch convention).
    Returns the NCHW high-frequency output; alpha_out=0 => low output is None.
    """
    N, cin_h, H, W = x_h.shape
    Nl, cin_l, Hl, Wl = x_l.shape
    assert Nl == N and Hl == H // 2 and Wl == W // 2
    assert H % 4 == 0 and W % 16 == 0, "requires H % 4 == 0 and W % 16 == 0"

    whh, wlh, shift = _fold_bn_weights(params)
    cout = whh.shape[1]

    r = _pick_column_group(W, cin_h, cout)   # output columns folded per group
    wg = W // r                              # column groups per row (mult of 8)
    cp = r * cout                            # fused output "channel" width
    kh = r * cin_h
    kl = (r // 2) * cin_l

    # Block-structured weight expansion: absorbs the column half of the 2x
    # nearest upsample into the matmul (out channel index = b*cout + co, where
    # b is the column offset inside a group of r output columns).
    eye_r = jnp.eye(r, dtype=jnp.float32)
    dup = jnp.kron(jnp.eye(r // 2, dtype=jnp.float32),
                   jnp.ones((1, 2), jnp.float32))                 # (r/2, r)
    whh_e = jnp.kron(eye_r, whh.astype(jnp.float32)).astype(jnp.bfloat16)
    wlh_e = jnp.kron(dup, wlh.astype(jnp.float32)).astype(jnp.bfloat16)
    bias_e = jnp.tile(shift, r).reshape(1, cp).astype(jnp.float32)

    # NCHW -> NHWC with the bf16 cast fused into the transpose, then free
    # contiguous reshapes into the 2-D column-group layout the kernel expects.
    xh2 = (jnp.transpose(x_h, (0, 2, 3, 1)).astype(jnp.bfloat16)
           .reshape(N * H * wg, kh))
    xl2 = (jnp.transpose(x_l, (0, 2, 3, 1)).astype(jnp.bfloat16)
           .reshape(N * (H // 2) * wg, kl))

    th = _pick_row_tile(H, wg, kh, kl, cp)
    grid = (N * (H // th),)

    out2 = pl.pallas_call(
        _make_out_oct_kernel(wg),
        out_shape=jax.ShapeDtypeStruct((N * H * wg, cp), jnp.float32),
        grid=grid,
        in_specs=[
            pl.BlockSpec((th * wg, kh), lambda i: (i, 0)),          # x_h tile
            pl.BlockSpec(((th // 2) * wg, kl), lambda i: (i, 0)),   # x_l tile
            pl.BlockSpec((kh, cp), lambda i: (0, 0)),               # w_hh (resident)
            pl.BlockSpec((kl, cp), lambda i: (0, 0)),               # w_lh (resident)
            pl.BlockSpec((1, cp), lambda i: (0, 0)),                # bias  (resident)
        ],
        out_specs=pl.BlockSpec((th * wg, cp), lambda i: (i, 0)),
        compiler_params=pltpu.CompilerParams(
            dimension_semantics=("parallel",),
            vmem_limit_bytes=32 * 1024 * 1024),
    )(xh2, xl2, whh_e, wlh_e, bias_e)

    # Free reshape back to NHWC, then to the PyTorch NCHW convention.
    y = out2.reshape(N, H, W, cout)
    return jnp.transpose(y, (0, 3, 1, 2))


# ----------------------------------------------------------------------------
# Pure-JAX reference (same bf16-rounded operands) and deterministic init
# ----------------------------------------------------------------------------
def out_oct_conv_reference(x_h, x_l, params):
    whh, wlh, shift = _fold_bn_weights(params)
    whh = whh.astype(jnp.float32)
    wlh = wlh.astype(jnp.float32)
    xh = jnp.transpose(x_h, (0, 2, 3, 1)).astype(jnp.bfloat16).astype(jnp.float32)
    xl = jnp.transpose(x_l, (0, 2, 3, 1)).astype(jnp.bfloat16).astype(jnp.float32)
    h2h = jnp.einsum("nhwc,cd->nhwd", xh, whh)
    l2h = jnp.einsum("nhwc,cd->nhwd", xl, wlh)
    l2h = jnp.repeat(jnp.repeat(l2h, 2, axis=1), 2, axis=2)
    y = h2h + l2h + shift.reshape(1, 1, 1, -1)
    return jnp.transpose(y, (0, 3, 1, 2))


def init_out_oct_conv_params(key, in_channels, out_channels, alpha_in=0.5):
    cin_l = int(alpha_in * in_channels)
    cin_h = in_channels - cin_l
    assert cin_h > 0 and cin_l > 0
    ks = jax.random.split(key, 6)
    w_hh = (jax.random.normal(ks[0], (out_channels, cin_h, 1, 1), jnp.float32)
            / jnp.sqrt(1.0 * cin_h))
    w_lh = (jax.random.normal(ks[1], (out_channels, cin_l, 1, 1), jnp.float32)
            / jnp.sqrt(1.0 * cin_l))
    return {
        "w_hh": w_hh,
        "w_lh": w_lh,
        "gamma": 1.0 + 0.1 * jax.random.normal(ks[2], (out_channels,), jnp.float32),
        "beta": 0.1 * jax.random.normal(ks[3], (out_channels,), jnp.float32),
        "running_mean": 0.1 * jax.random.normal(ks[4], (out_channels,), jnp.float32),
        "running_var": 1.0 + 0.1 * jnp.abs(
            jax.random.normal(ks[5], (out_channels,), jnp.float32)),
    }


# ----------------------------------------------------------------------------
if __name__ == "__main__":
    key = jax.random.PRNGKey(0)
    k_xh, k_xl, k_p = jax.random.split(key, 3)

    in_channels, out_channels, alpha_in = 4, 8, 0.5
    N, H, W = 2, 16, 16
    cin_l = int(alpha_in * in_channels)
    cin_h = in_channels - cin_l

    # Octave input: high-freq at full resolution, low-freq at half resolution.
    x_h = jax.random.normal(k_xh, (N, cin_h, H, W), jnp.float32)          # NCHW
    x_l = jax.random.normal(k_xl, (N, cin_l, H // 2, W // 2), jnp.float32)

    params = init_out_oct_conv_params(k_p, in_channels, out_channels, alpha_in)

    fwd = jax.jit(functools.partial(out_oct_conv_forward))
    y = fwd(x_h, x_l, params)
    jax.block_until_ready(y)

    assert y.shape == (N, out_channels, H, W)
    assert bool(jnp.all(jnp.isfinite(y)))

    y_ref = out_oct_conv_reference(x_h, x_l, params)
    max_err = float(jnp.max(jnp.abs(y - y_ref)))
    assert bool(jnp.allclose(y, y_ref, atol=5e-3, rtol=5e-3)), max_err

    print("KERNEL_OK")
</pallas_src>

<mosaic_0001>
module attributes {stable_mosaic.version = 11 : i64} {
  func.func @kernel(%arg0: i32, %arg1: memref<128x4xbf16, #tpu.memory_space<vmem>>, %arg2: memref<64x2xbf16, #tpu.memory_space<vmem>>, %arg3: memref<4x16xbf16, #tpu.memory_space<vmem>>, %arg4: memref<2x16xbf16, #tpu.memory_space<vmem>>, %arg5: memref<1x16xf32, #tpu.memory_space<vmem>>, %arg6: memref<128x16xf32, #tpu.memory_space<vmem>>) attributes {dimension_semantics = [#tpu.dimension_semantics<parallel>], iteration_bounds = array<i64: 2>, scalar_prefetch = 0 : i64, scratch_operands = 0 : i64, tpu.core_type = #tpu.core_type<tc>, window_params = [{transform_indices = @transform_0, window_bounds = array<i64: 128, 4>}, {transform_indices = @transform_1, window_bounds = array<i64: 64, 2>}, {pipeline_mode = #tpu.pipeline_mode<synchronous>, transform_indices = @transform_2, window_bounds = array<i64: 4, 16>}, {pipeline_mode = #tpu.pipeline_mode<synchronous>, transform_indices = @transform_3, window_bounds = array<i64: 2, 16>}, {pipeline_mode = #tpu.pipeline_mode<synchronous>, transform_indices = @transform_4, window_bounds = array<i64: 1, 16>}, {transform_indices = @transform_5, window_bounds = array<i64: 128, 16>}]} {
    %c0 = arith.constant 0 : index
    %c0_0 = arith.constant 0 : index
    %0 = vector.load %arg1[%c0, %c0_0] : memref<128x4xbf16, #tpu.memory_space<vmem>>, vector<128x4xbf16>
    %c0_1 = arith.constant 0 : index
    %c0_2 = arith.constant 0 : index
    %1 = vector.load %arg3[%c0_1, %c0_2] : memref<4x16xbf16, #tpu.memory_space<vmem>>, vector<4x16xbf16>
    %cst = arith.constant dense<0.000000e+00> : vector<128x16xf32>
    %2 = tpu.matmul %0, %1, %cst {dimension_numbers = #tpu.dot_dimension_numbers<[1], [0], [0], [1], [0, 0, 1, 1], [], []>} : vector<128x4xbf16>, vector<4x16xbf16>, vector<128x16xf32> -> vector<128x16xf32>
    %c0_3 = arith.constant 0 : index
    %c0_4 = arith.constant 0 : index
    %3 = vector.load %arg2[%c0_3, %c0_4] : memref<64x2xbf16, #tpu.memory_space<vmem>>, vector<64x2xbf16>
    %c0_5 = arith.constant 0 : index
    %c0_6 = arith.constant 0 : index
    %4 = vector.load %arg4[%c0_5, %c0_6] : memref<2x16xbf16, #tpu.memory_space<vmem>>, vector<2x16xbf16>
    %cst_7 = arith.constant dense<0.000000e+00> : vector<64x16xf32>
    %5 = tpu.matmul %3, %4, %cst_7 {dimension_numbers = #tpu.dot_dimension_numbers<[1], [0], [0], [1], [0, 0, 1, 1], [], []>} : vector<64x2xbf16>, vector<2x16xbf16>, vector<64x16xf32> -> vector<64x16xf32>
    %6 = vector.shape_cast %2 : vector<128x16xf32> to vector<8x2x8x16xf32>
    %7 = vector.shape_cast %5 : vector<64x16xf32> to vector<8x1x8x16xf32>
    %c0_8 = arith.constant 0 : index
    %c0_9 = arith.constant 0 : index
    %8 = vector.load %arg5[%c0_8, %c0_9] : memref<1x16xf32, #tpu.memory_space<vmem>>, vector<1x16xf32>
    %9 = vector.shape_cast %8 : vector<1x16xf32> to vector<1x1x1x16xf32>
    %10 = vector.broadcast %7 : vector<8x1x8x16xf32> to vector<8x2x8x16xf32>
    %11 = arith.addf %6, %10 : vector<8x2x8x16xf32>
    %12 = vector.broadcast %9 : vector<1x1x1x16xf32> to vector<8x2x8x16xf32>
    %13 = arith.addf %11, %12 : vector<8x2x8x16xf32>
    %14 = vector.shape_cast %13 : vector<8x2x8x16xf32> to vector<128x16xf32>
    %c0_10 = arith.constant 0 : index
    %c0_11 = arith.constant 0 : index
    %15 = vector.load %arg6[%c0_10, %c0_11] : memref<128x16xf32, #tpu.memory_space<vmem>>, vector<128x16xf32>
    tpu.vector_store %arg6[%c0_10, %c0_11], %14 {strides = array<i32>} : memref<128x16xf32, #tpu.memory_space<vmem>>, vector<128x16xf32>,
    return
  }
  func.func @transform_0(%arg0: i32) -> (i32, i32) {
    %c0_i32 = arith.constant 0 : i32
    %c0_i32_0 = arith.constant 0 : i32
    return %arg0, %c0_i32 : i32, i32
  }
  func.func @transform_1(%arg0: i32) -> (i32, i32) {
    %c0_i32 = arith.constant 0 : i32
    %c0_i32_0 = arith.constant 0 : i32
    return %arg0, %c0_i32 : i32, i32
  }
  func.func @transform_2(%arg0: i32) -> (i32, i32) {
    %c0_i32 = arith.constant 0 : i32
    %c0_i32_0 = arith.constant 0 : i32
    %c0_i32_1 = arith.constant 0 : i32
    return %c0_i32, %c0_i32_0 : i32, i32
  }
  func.func @transform_3(%arg0: i32) -> (i32, i32) {
    %c0_i32 = arith.constant 0 : i32
    %c0_i32_0 = arith.constant 0 : i32
    %c0_i32_1 = arith.constant 0 : i32
    return %c0_i32, %c0_i32_0 : i32, i32
  }
  func.func @transform_4(%arg0: i32) -> (i32, i32) {
    %c0_i32 = arith.constant 0 : i32
    %c0_i32_0 = arith.constant 0 : i32
    %c0_i32_1 = arith.constant 0 : i32
    return %c0_i32, %c0_i32_0 : i32, i32
  }
  func.func @transform_5(%arg0: i32) -> (i32, i32) {
    %c0_i32 = arith.constant 0 : i32
    %c0_i32_0 = arith.constant 0 : i32
    return %arg0, %c0_i32 : i32, i32
  }
}

</mosaic_0001>

<bundles_post_ra>
// kernel: tile.8
= control target key start
LH: loop header
LB: loop body
LE: loop exit
PB: predicated region body
PF: predicated region fallthrough
CT: control target
= control target key end

     0   :  { %s22_s0 = inlined_call_operand.vmem [shape: f32[8], index: 0, kind: input, shape index: {}]   ;;  %s23_s1 = inlined_call_operand.vmem [shape: f32[2,8], index: 1, kind: output, shape index: {}]  }
   0x1   :  { %v4_v0 = vld [vmem:[%s22_s0] ss:$0 sm:$0xff] }
   0x2   :  { %5 = vst [vmem:[%s23_s1] sm:$0x3] %v4_v0 }

// kernel: tile.9
= control target key start
LH: loop header
LB: loop body
LE: loop exit
PB: predicated region body
PF: predicated region fallthrough
CT: control target
= control target key end

     0   :  { %vm8_vm0 = vcmask 64512   ;;  %vm14_vm1 = vcmask 130112   ;;  %s42_s0 = inlined_call_operand.vmem [shape: f32[2,8], index: 0, kind: input, shape index: {}]   ;;  %s43_s1 = inlined_call_operand.vmem [shape: f32[1,16], index: 1, kind: output, shape index: {}]  }
   0x1   :  { %v5_v0 = vld [vmem:[%s42_s0] sm:$0x3]  ;;  %s25_s0 = smov 8  }
   0x2   :  { %6 = vst [vmem:[#allocation1] sm:$0x3] %v5_v0 }
   0x9   :  { %v11_v1 = vld [vmem:[#allocation1 + $0x1] sm:$0x1]   ;;  %v7_v2 = vld [vmem:[#allocation1] sm:$0x1]  }
   0xa   :  { %12 = vrot.lane.b32.xlu0 %v11_v1, %s25_s0  ;;  %9 = vst.msk [vmem:[#allocation0] sm:$0x1] %vm8_vm0, %v7_v2  }
  0x7c   :  { %v13_v3 = vpop.permute.xlu0 %12  }
  0x7d   :  { %15 = vst.msk [vmem:[#allocation0] sm:$0x1] %vm14_vm1, %v13_v3  }
  0x84   :  { %v20_v4 = vld [vmem:[#allocation0] sm:$0x1] }
  0x85   :  { %23 = vst [vmem:[%s43_s1] sm:$0x1] %v20_v4 }

// kernel: out_oct_conv_forward.1
= control target key start
LH: loop header
LB: loop body
LE: loop exit
PB: predicated region body
PF: predicated region fallthrough
CT: control target
= control target key end

     0   :  { %s812_s18 = smov 0   ;;  %s893_s0 = inlined_call_operand.vmem [shape: bf16[256,4], index: 0, kind: input, shape index: {}]   ;;  %s894_s1 = inlined_call_operand.vmem [shape: bf16[128,2], index: 1, kind: input, shape index: {}]   ;;  %s895_s2 = inlined_call_operand.vmem [shape: bf16[4,16], index: 2, kind: input, shape index: {}]   ;;  %s896_s3 = inlined_call_operand.vmem [shape: bf16[2,16], index: 3, kind: input, shape index: {}]   ;;  %s897_s4 = inlined_call_operand.vmem [shape: f32[1,16], index: 4, kind: input, shape index: {}]   ;;  %s898_s5 = inlined_call_operand.vmem [shape: f32[256,16], index: 5, kind: output, shape index: {}]  }
   0x1 LB: > { %s669_s19 = sadd.s32 4294967295, %s780_s18   ;;  %p673_p0 = scmp.ge.s32.totalorder %s780_s18, 1  ;;  %s780_s18 = sphi %s812_s18, %s15_s18  }
   0x2   : > { %p199_p1 = scmp.lt.s32.totalorder %s780_s18, 3 }
   0x4   : > { %p200_p2 = pnand %p673_p0, %p199_p1 }
   0x5   : > { %s674_s22 = sshll.u32 (!%p200_p2), %s669_s19, 4  ;;  %s676_s25 = sshll.u32 (!%p200_p2), %s669_s19, 3 }
   0x6   : > { %203 = sbr.rel (%p200_p2) target bundleno = 237 (0xed), region = 40  ;;  %p233_p3 = scmp.lt.s32.totalorder (!%p200_p2), %s674_s22, 31 }
   0x7   : > { %p239_p4 = scmp.lt.s32.totalorder (!%p200_p2), %s676_s25, 15 }
   0xb   : > { %v267_v0 = vld [vmem:[%s895_s2] sm:$0x3]  ;;  %vm333_vm0 = vcmask 1041408   ;;  %vm476_vm1 = vcmask 1040384   ;;  %s900_s22 = smov (!%p233_p3, %s674_s22), 31  ;;  %s902_s25 = smov (!%p239_p4, %s676_s25), 15 }
   0xc   : > { %752 = vmatprep.subr.msk.bf16.mxu1 %vm333_vm0, %v267_v0  ;;  %751 = vmatprep.subr.msk.bf16.mxu0 %vm333_vm0, %v267_v0  ;;  %v335_v1 = vsel %vm333_vm0, %v267_v0, 0  ;;  %v442_v2 = vld [vmem:[%s896_s3] sm:$0x1]  ;;  %s675_s26 = sshll.u32 %s900_s22, 2  ;;  %vm308_vm2 = vcmask 31744   ;;  %s677_s30 = sshll.u32 %s902_s25, 2 }
   0xd   : > { %750 = vmatpush3.bf16.msra.mxu1 %v335_v1  ;;  %722 = vmatpush3.bf16.msra.mxu0 %v335_v1  ;;  %s236_s29 = scalar_lea.vmem %s893_s0, %s675_s26  ;;  %s242_s8 = scalar_lea.vmem %s894_s1, %s677_s30  ;;  %v478_v7 = vsel %vm476_vm1, %v442_v2, 0  ;;  %vm463_vm3 = vcmask 15360   ;;  %v704_v27 = vld [vmem:[%s897_s4] ss:$0 sm:$0xff]  ;;  %vm584_vm4 = vcmask 130048  }
   0xe   : > { %753 = vmatprep.subr.msk.bf16.mxu1 %vm476_vm1, %v442_v2  ;;  %v762_v3 = vld [vmem:[%s236_s29] sm:$0xff]   ;;  %v763_v4 = vld [vmem:[%s236_s29 + $0x30] sm:$0xff]   ;;  %v764_v5 = vld [vmem:[%s236_s29 + $0x8] sm:$0xff]   ;;  %s679_s9 = sshll.u32 %s900_s22, 3 }
   0xf   : > { %723 = vmatprep.mubr.msk.bf16.mxu0 %vm308_vm2, %v762_v3  ;;  %735 = vmatprep.mubr.msk.bf16.mxu1 %vm308_vm2, %v763_v4  ;;  %v765_v6 = vld [vmem:[%s236_s29 + $0x38] sm:$0xff]   ;;  %v766_v8 = vld [vmem:[%s236_s29 + $0x10] sm:$0xff]   ;;  %v767_v9 = vld [vmem:[%s242_s8] sm:$0xff]   ;;  %s856_s14 = scalar_lea.vmem %s898_s5, %s679_s9 }
  0x10   : > { %724 = vmatmul.mubr.msk.bf16.vlgmr.msra.gmra.mxu0 %vm308_vm2, %v764_v5  ;;  %736 = vmatmul.mubr.msk.bf16.vlgmr.msra.gmra.mxu1 %vm308_vm2, %v765_v6  ;;  %v768_v10 = vld [vmem:[%s236_s29 + $0x18] sm:$0xff]   ;;  %v769_v11 = vld [vmem:[%s242_s8 + $0x8] sm:$0xff]   ;;  %v770_v12 = vld [vmem:[%s236_s29 + $0x20] sm:$0xff]  }
  0x11   : > { %740 = vmatpush3.bf16.msra.mxu1 %v478_v7  ;;  %727 = vmatprep.mubr.msk.bf16.mxu0 %vm308_vm2, %v766_v8  ;;  %v771_v13 = vld [vmem:[%s242_s8 + $0x10] sm:$0xff]   ;;  %v772_v14 = vld [vmem:[%s236_s29 + $0x28] sm:$0xff]   ;;  %v773_v15 = vld [vmem:[%s242_s8 + $0x18] sm:$0xff]  }
  0x12   : > { %741 = vmatprep.mubr.msk.bf16.mxu1 %vm463_vm3, %v767_v9 }
  0x18   : > { %728 = vmatmul.mubr.msk.bf16.gmra.mxu0 %vm308_vm2, %v768_v10  ;;  %742 = vmatmul.mubr.msk.bf16.vlgmr.msra.gmra.mxu1 %vm463_vm3, %v769_v11 }
  0x19   : > { %731 = vmatprep.mubr.msk.bf16.mxu0 %vm308_vm2, %v770_v12  ;;  %745 = vmatprep.mubr.msk.bf16.mxu1 %vm463_vm3, %v771_v13 }
  0x20   : > { %732 = vmatmul.mubr.msk.bf16.gmra.mxu0 %vm308_vm2, %v772_v14  ;;  %746 = vmatmul.mubr.msk.bf16.gmra.mxu1 %vm463_vm3, %v773_v15 }
  0xd0   : > { %v725_v16 = vpop.f32.mrf.mxu0  ;;  %v737_v17 = vpop.f32.mrf.mxu1 }
  0xd2   : > { %v371_v18 = vpop.f32.mrf.mxu0  ;;  %v419_v19 = vpop.f32.mrf.mxu1 }
  0xd4   : > { %v726_v20 = vpop.f32.mrf.mxu0  ;;  %v738_v21 = vpop.f32.mrf.mxu1 }
  0xd6   : > { %v374_v22 = vpop.f32.mrf.mxu0  ;;  %v422_v23 = vpop.f32.mrf.mxu1 }
  0xd8   : > { %v729_v24 = vpop.f32.mrf.mxu0  ;;  %v743_v25 = vpop.f32.mrf.mxu1 }
  0xda   : > { %v387_v26 = vpop.f32.mrf.mxu0  ;;  %v514_v29 = vpop.f32.mrf.mxu1 }
  0xdb   : > { %v550_v28 = vadd.f32 %v743_v25, %v387_v26  ;;  %v546_v30 = vadd.f32 %v514_v29, %v371_v18  ;;  %v547_v31 = vadd.f32 %v514_v29, %v374_v22 }
  0xdc   : > { %v730_v32 = vpop.f32.mrf.mxu0  ;;  %v744_v34 = vpop.f32.mrf.mxu1 }
  0xdd   : > { %v572_v33 = vadd.f32 %v704_v27, %v550_v28  ;;  %v568_v35 = vadd.f32 %v704_v27, %v546_v30  ;;  %v569_v36 = vadd.f32 %v704_v27, %v547_v31  ;;  %v552_v37 = vadd.f32 %v744_v34, %v729_v24 }
  0xde   : > { %v553_v38 = vadd.f32 %v744_v34, %v730_v32  ;;  %v390_v39 = vpop.f32.mrf.mxu0  ;;  %v517_v41 = vpop.f32.mrf.mxu1 }
  0xdf   : > { %589 = vst.msk [vmem:[%s856_s14 + $0x20] sm:$0xff] %vm584_vm4, %v572_v33  ;;  %v551_v40 = vadd.f32 %v743_v25, %v390_v39  ;;  %585 = vst.msk [vmem:[%s856_s14] sm:$0xff] %vm584_vm4, %v568_v35  ;;  %v574_v42 = vadd.f32 %v704_v27, %v552_v37  ;;  %v548_v44 = vadd.f32 %v725_v16, %v517_v41 }
  0xe0   : > { %586 = vst.msk [vmem:[%s856_s14 + $0x8] sm:$0xff] %vm584_vm4, %v569_v36  ;;  %v575_v43 = vadd.f32 %v704_v27, %v553_v38  ;;  %v549_v45 = vadd.f32 %v726_v20, %v517_v41  ;;  %v733_v46 = vpop.f32.mrf.mxu0  ;;  %v747_v48 = vpop.f32.mrf.mxu1 }
  0xe1   : > { %v573_v47 = vadd.f32 %v704_v27, %v551_v40  ;;  %591 = vst.msk [vmem:[%s856_s14 + $0x30] sm:$0xff] %vm584_vm4, %v574_v42  ;;  %v570_v49 = vadd.f32 %v704_v27, %v548_v44  ;;  %v558_v51 = vadd.f32 %v747_v48, %v419_v19  ;;  %v559_v52 = vadd.f32 %v747_v48, %v422_v23 }
  0xe2   : > { %592 = vst.msk [vmem:[%s856_s14 + $0x38] sm:$0xff] %vm584_vm4, %v575_v43  ;;  %v571_v50 = vadd.f32 %v704_v27, %v549_v45  ;;  %v403_v53 = vpop.f32.mrf.mxu0  ;;  %v530_v54 = vpop.f32.mrf.mxu1 }
  0xe3   : > { %590 = vst.msk [vmem:[%s856_s14 + $0x28] sm:$0xff] %vm584_vm4, %v573_v47  ;;  %587 = vst.msk [vmem:[%s856_s14 + $0x10] sm:$0xff] %vm584_vm4, %v570_v49  ;;  %v580_v55 = vadd.f32 %v704_v27, %v558_v51  ;;  %v581_v56 = vadd.f32 %v704_v27, %v559_v52  ;;  %v554_v57 = vadd.f32 %v530_v54, %v403_v53 }
  0xe4   : > { %588 = vst.msk [vmem:[%s856_s14 + $0x18] sm:$0xff] %vm584_vm4, %v571_v50  ;;  %v734_v58 = vpop.f32.mrf.mxu0  ;;  %v748_v59 = vpop.f32.mrf.mxu1 }
  0xe5   : > { %597 = vst.msk [vmem:[%s856_s14 + $0x60] sm:$0xff] %vm584_vm4, %v580_v55  ;;  %598 = vst.msk [vmem:[%s856_s14 + $0x68] sm:$0xff] %vm584_vm4, %v581_v56  ;;  %v576_v60 = vadd.f32 %v704_v27, %v554_v57  ;;  %v560_v61 = vadd.f32 %v748_v59, %v737_v17  ;;  %v561_v62 = vadd.f32 %v748_v59, %v738_v21 }
  0xe6   : > { %v406_v63 = vpop.f32.mrf.mxu0  ;;  %v533_v1 = vpop.f32.mrf.mxu1 }
  0xe7   : > { %v555_v0 = vadd.f32 %v530_v54, %v406_v63  ;;  %593 = vst.msk [vmem:[%s856_s14 + $0x40] sm:$0xff] %vm584_vm4, %v576_v60  ;;  %v582_v2 = vadd.f32 %v704_v27, %v560_v61  ;;  %v583_v3 = vadd.f32 %v704_v27, %v561_v62  ;;  %v556_v4 = vadd.f32 %v733_v46, %v533_v1 }
  0xe8   : > { %v557_v5 = vadd.f32 %v734_v58, %v533_v1 }
  0xe9   : > { %v577_v6 = vadd.f32 %v704_v27, %v555_v0  ;;  %599 = vst.msk [vmem:[%s856_s14 + $0x70] sm:$0xff] %vm584_vm4, %v582_v2  ;;  %600 = vst.msk [vmem:[%s856_s14 + $0x78] sm:$0xff] %vm584_vm4, %v583_v3  ;;  %v578_v7 = vadd.f32 %v704_v27, %v556_v4 }
  0xea   : > { %v579_v8 = vadd.f32 %v704_v27, %v557_v5 }
  0xeb   : > { %594 = vst.msk [vmem:[%s856_s14 + $0x48] sm:$0xff] %vm584_vm4, %v577_v6  ;;  %595 = vst.msk [vmem:[%s856_s14 + $0x50] sm:$0xff] %vm584_vm4, %v578_v7 }
  0xec   : > { %596 = vst.msk [vmem:[%s856_s14 + $0x58] sm:$0xff] %vm584_vm4, %v579_v8 }
  0xed PF: > { %s15_s18 = sadd.s32 1, %s780_s18  }
  0xee   : > { %p12_p5 = scmp.ge.s32.totalorder %s15_s18, 4  }
  0xf0   :  { %14 = sbr.rel (!%p12_p5) target bundleno = 1 (0x1), region = 73 }

</bundles_post_ra>
